<compile_context>
chip_gen: v5e
topology: v5e:2x2
jax: 0.10.0
libtpu: 0.0.40
codegen_flags: <defaults>
</compile_context>

<pallas_src>
import jax
import jax.numpy as jnp
from jax.experimental import pallas as pl
from jax.experimental.pallas import tpu as pltpu

SCALE = 40.0
HALF_SCALE = SCALE / 2.0
LANES = 128  # lane width: all weight "out" dims and the kernel output are padded to this


def mlp_kernel(x_ref, w1_ref, b1_ref, w2_ref, b2_ref, w3_ref, b3_ref, o_ref):
    # x may arrive as bf16 (HBM-bytes saving); all VPU/EUP/MXU math stays f32
    # (important on v5e which has no bf16 VALU/EUP path).
    x = x_ref[...].astype(jnp.float32)

    # fc1 ; 40*sigmoid(z) - 20 == 20*tanh(z/2)
    h = jnp.dot(x, w1_ref[...], preferred_element_type=jnp.float32) + b1_ref[...]
    h = HALF_SCALE * jnp.tanh(h * 0.5)

    # fc2 ; same affine-sigmoid
    h = jnp.dot(h, w2_ref[...], preferred_element_type=jnp.float32) + b2_ref[...]
    h = HALF_SCALE * jnp.tanh(h * 0.5)

    # fc3 (output lane-padded to 128 wide; padded columns are exactly 0)
    h = jnp.dot(h, w3_ref[...], preferred_element_type=jnp.float32) + b3_ref[...]
    o_ref[...] = h.astype(o_ref.dtype)


def _pad_to(a, shape):
    return jnp.pad(a, [(0, t - s) for s, t in zip(a.shape, shape)])


def _prepare_params(params):
    """Zero-pad weights/biases to lane-aligned shapes.

    Exactness argument: padded output columns of layer k get bias 0 and weight
    column 0, so pre-activation is 0 and 20*tanh(0/2) == 0 exactly; the
    corresponding (padded) input rows of layer k+1 are 0, so they contribute
    nothing. The final padded output columns are exactly 0 and get sliced off.
    """
    w1, b1, w2, b2, w3, b3 = params
    w1p = _pad_to(w1, (w1.shape[0], LANES))   # (30, 128)
    b1p = _pad_to(b1, (1, LANES))
    w2p = _pad_to(w2, (LANES, LANES))         # (128, 128)
    b2p = _pad_to(b2, (1, LANES))
    w3p = _pad_to(w3, (LANES, LANES))         # (128, 128)
    b3p = _pad_to(b3, (1, LANES))
    return w1p, b1p, w2p, b2p, w3p, b3p


def mlp_forward(x, params, *, block_rows=512):
    """x: [B, 30] (f32 or bf16). Returns [B, 3] f32."""
    w1, b1, w2, b2, w3, b3 = params
    out_dim = w3.shape[1]
    B, F = x.shape

    w1p, b1p, w2p, b2p, w3p, b3p = _prepare_params(params)

    # Batch tile: multiple of 8 sublanes, capped at block_rows.  Pad B up to a
    # multiple of TB (padded rows compute valid-but-discarded values).
    TB = min(block_rows, pl.cdiv(B, 8) * 8)
    Bp = pl.cdiv(B, TB) * TB
    if Bp != B:
        x = jnp.pad(x, ((0, Bp - B), (0, 0)))

    const = lambda a: pl.BlockSpec(a.shape, lambda i: (0, 0))

    out_padded = pl.pallas_call(
        mlp_kernel,
        out_shape=jax.ShapeDtypeStruct((Bp, LANES), jnp.float32),
        grid=(Bp // TB,),
        in_specs=[
            pl.BlockSpec((TB, F), lambda i: (i, 0)),   # x: tiled along batch
            const(w1p), const(b1p),                    # weights resident in VMEM
            const(w2p), const(b2p),
            const(w3p), const(b3p),
        ],
        out_specs=pl.BlockSpec((TB, LANES), lambda i: (i, 0)),  # lane-dense store
        compiler_params=pltpu.CompilerParams(
            dimension_semantics=("parallel",),  # megacore-shard batch axis (v7x)
        ),
    )(x, w1p, b1p, w2p, b2p, w3p, b3p)

    return out_padded[:B, :out_dim]


def init_params(key):
    """Deterministic init mimicking PyTorch Linear (uniform +-1/sqrt(fan_in)).
    Weights are stored as [in, out] (transposed vs torch)."""
    def linear(key, fan_in, fan_out):
        kw, kb = jax.random.split(key)
        bound = 1.0 / jnp.sqrt(fan_in)
        w = jax.random.uniform(kw, (fan_in, fan_out), jnp.float32, -bound, bound)
        b = jax.random.uniform(kb, (1, fan_out), jnp.float32, -bound, bound)
        return w, b

    k1, k2, k3 = jax.random.split(key, 3)
    w1, b1 = linear(k1, 30, 20)
    w2, b2 = linear(k2, 20, 10)
    w3, b3 = linear(k3, 10, 3)
    return (w1, b1, w2, b2, w3, b3)


def reference_forward(x, params):
    w1, b1, w2, b2, w3, b3 = params
    h = jax.nn.sigmoid(x @ w1 + b1) * SCALE - SCALE / 2.0
    h = jax.nn.sigmoid(h @ w2 + b2) * SCALE - SCALE / 2.0
    return h @ w3 + b3


if __name__ == "__main__":
    key = jax.random.PRNGKey(0)
    k_param, k_x1, k_x2 = jax.random.split(key, 3)
    params = init_params(k_param)

    # Small batch (single tile), strict check against the f32 reference.
    x_small = jax.random.normal(k_x1, (8, 30), jnp.float32)
    out_small = mlp_forward(x_small, params)
    jax.block_until_ready(out_small)
    ref_small = reference_forward(x_small, params)
    assert out_small.shape == (8, 3)
    assert jnp.allclose(out_small, ref_small, atol=1e-3, rtol=1e-4)

    # Ragged multi-tile batch (exercises grid tiling + last-tile padding).
    x_big = jax.random.normal(k_x2, (1029, 30), jnp.float32)
    out_big = mlp_forward(x_big, params, block_rows=512)
    jax.block_until_ready(out_big)
    ref_big = reference_forward(x_big, params)
    assert out_big.shape == (1029, 3)
    assert jnp.allclose(out_big, ref_big, atol=1e-3, rtol=1e-4)

    # bf16 storage path for x (halves HBM input traffic); compute stays f32 so
    # it matches the reference evaluated on the bf16-quantized inputs.
    x_bf16 = x_big.astype(jnp.bfloat16)
    out_bf16 = mlp_forward(x_bf16, params, block_rows=512)
    jax.block_until_ready(out_bf16)
    ref_bf16 = reference_forward(x_bf16.astype(jnp.float32), params)
    assert out_bf16.shape == (1029, 3)
    assert jnp.allclose(out_bf16, ref_bf16, atol=1e-2, rtol=1e-3)

    print("KERNEL_OK")
</pallas_src>

<mosaic_0001>
module attributes {stable_mosaic.version = 11 : i64} {
  func.func @mlp_kernel(%arg0: i32, %arg1: memref<8x30xf32, #tpu.memory_space<vmem>>, %arg2: memref<30x128xf32, #tpu.memory_space<vmem>>, %arg3: memref<1x128xf32, #tpu.memory_space<vmem>>, %arg4: memref<128x128xf32, #tpu.memory_space<vmem>>, %arg5: memref<1x128xf32, #tpu.memory_space<vmem>>, %arg6: memref<128x128xf32, #tpu.memory_space<vmem>>, %arg7: memref<1x128xf32, #tpu.memory_space<vmem>>, %arg8: memref<8x128xf32, #tpu.memory_space<vmem>>) attributes {dimension_semantics = [#tpu.dimension_semantics<parallel>], iteration_bounds = array<i64: 1>, scalar_prefetch = 0 : i64, scratch_operands = 0 : i64, tpu.core_type = #tpu.core_type<tc>, window_params = [{transform_indices = @transform_0, window_bounds = array<i64: 8, 30>}, {pipeline_mode = #tpu.pipeline_mode<synchronous>, transform_indices = @transform_1, window_bounds = array<i64: 30, 128>}, {pipeline_mode = #tpu.pipeline_mode<synchronous>, transform_indices = @transform_2, window_bounds = array<i64: 1, 128>}, {pipeline_mode = #tpu.pipeline_mode<synchronous>, transform_indices = @transform_3, window_bounds = array<i64: 128, 128>}, {pipeline_mode = #tpu.pipeline_mode<synchronous>, transform_indices = @transform_4, window_bounds = array<i64: 1, 128>}, {pipeline_mode = #tpu.pipeline_mode<synchronous>, transform_indices = @transform_5, window_bounds = array<i64: 128, 128>}, {pipeline_mode = #tpu.pipeline_mode<synchronous>, transform_indices = @transform_6, window_bounds = array<i64: 1, 128>}, {transform_indices = @transform_7, window_bounds = array<i64: 8, 128>}]} {
    %c0 = arith.constant 0 : index
    %c0_0 = arith.constant 0 : index
    %0 = vector.load %arg1[%c0, %c0_0] : memref<8x30xf32, #tpu.memory_space<vmem>>, vector<8x30xf32>
    %c0_1 = arith.constant 0 : index
    %c0_2 = arith.constant 0 : index
    %1 = vector.load %arg2[%c0_1, %c0_2] : memref<30x128xf32, #tpu.memory_space<vmem>>, vector<30x128xf32>
    %cst = arith.constant dense<0.000000e+00> : vector<8x128xf32>
    %2 = tpu.matmul %0, %1, %cst {dimension_numbers = #tpu.dot_dimension_numbers<[1], [0], [0], [1], [0, 0, 1, 1], [], []>} : vector<8x30xf32>, vector<30x128xf32>, vector<8x128xf32> -> vector<8x128xf32>
    %c0_3 = arith.constant 0 : index
    %c0_4 = arith.constant 0 : index
    %3 = vector.load %arg3[%c0_3, %c0_4] : memref<1x128xf32, #tpu.memory_space<vmem>>, vector<1x128xf32>
    %4 = vector.broadcast %3 : vector<1x128xf32> to vector<8x128xf32>
    %5 = arith.addf %2, %4 : vector<8x128xf32>
    %cst_5 = arith.constant 5.000000e-01 : f32
    %6 = vector.broadcast %cst_5 : f32 to vector<8x128xf32>
    %7 = arith.mulf %5, %6 : vector<8x128xf32>
    %8 = math.tanh %7 : vector<8x128xf32>
    %cst_6 = arith.constant 2.000000e+01 : f32
    %9 = vector.broadcast %cst_6 : f32 to vector<8x128xf32>
    %10 = arith.mulf %9, %8 : vector<8x128xf32>
    %c0_7 = arith.constant 0 : index
    %c0_8 = arith.constant 0 : index
    %11 = vector.load %arg4[%c0_7, %c0_8] : memref<128x128xf32, #tpu.memory_space<vmem>>, vector<128x128xf32>
    %cst_9 = arith.constant dense<0.000000e+00> : vector<8x128xf32>
    %12 = tpu.matmul %10, %11, %cst_9 {dimension_numbers = #tpu.dot_dimension_numbers<[1], [0], [0], [1], [0, 0, 1, 1], [], []>} : vector<8x128xf32>, vector<128x128xf32>, vector<8x128xf32> -> vector<8x128xf32>
    %c0_10 = arith.constant 0 : index
    %c0_11 = arith.constant 0 : index
    %13 = vector.load %arg5[%c0_10, %c0_11] : memref<1x128xf32, #tpu.memory_space<vmem>>, vector<1x128xf32>
    %14 = vector.broadcast %13 : vector<1x128xf32> to vector<8x128xf32>
    %15 = arith.addf %12, %14 : vector<8x128xf32>
    %cst_12 = arith.constant 5.000000e-01 : f32
    %16 = vector.broadcast %cst_12 : f32 to vector<8x128xf32>
    %17 = arith.mulf %15, %16 : vector<8x128xf32>
    %18 = math.tanh %17 : vector<8x128xf32>
    %cst_13 = arith.constant 2.000000e+01 : f32
    %19 = vector.broadcast %cst_13 : f32 to vector<8x128xf32>
    %20 = arith.mulf %19, %18 : vector<8x128xf32>
    %c0_14 = arith.constant 0 : index
    %c0_15 = arith.constant 0 : index
    %21 = vector.load %arg6[%c0_14, %c0_15] : memref<128x128xf32, #tpu.memory_space<vmem>>, vector<128x128xf32>
    %cst_16 = arith.constant dense<0.000000e+00> : vector<8x128xf32>
    %22 = tpu.matmul %20, %21, %cst_16 {dimension_numbers = #tpu.dot_dimension_numbers<[1], [0], [0], [1], [0, 0, 1, 1], [], []>} : vector<8x128xf32>, vector<128x128xf32>, vector<8x128xf32> -> vector<8x128xf32>
    %c0_17 = arith.constant 0 : index
    %c0_18 = arith.constant 0 : index
    %23 = vector.load %arg7[%c0_17, %c0_18] : memref<1x128xf32, #tpu.memory_space<vmem>>, vector<1x128xf32>
    %24 = vector.broadcast %23 : vector<1x128xf32> to vector<8x128xf32>
    %25 = arith.addf %22, %24 : vector<8x128xf32>
    %c0_19 = arith.constant 0 : index
    %c0_20 = arith.constant 0 : index
    %26 = vector.load %arg8[%c0_19, %c0_20] : memref<8x128xf32, #tpu.memory_space<vmem>>, vector<8x128xf32>
    tpu.vector_store %arg8[%c0_19, %c0_20], %25 {strides = array<i32>} : memref<8x128xf32, #tpu.memory_space<vmem>>, vector<8x128xf32>,
    return
  }
  func.func @transform_0(%arg0: i32) -> (i32, i32) {
    %c0_i32 = arith.constant 0 : i32
    %c0_i32_0 = arith.constant 0 : i32
    return %arg0, %c0_i32 : i32, i32
  }
  func.func @transform_1(%arg0: i32) -> (i32, i32) {
    %c0_i32 = arith.constant 0 : i32
    %c0_i32_0 = arith.constant 0 : i32
    %c0_i32_1 = arith.constant 0 : i32
    return %c0_i32, %c0_i32_0 : i32, i32
  }
  func.func @transform_2(%arg0: i32) -> (i32, i32) {
    %c0_i32 = arith.constant 0 : i32
    %c0_i32_0 = arith.constant 0 : i32
    %c0_i32_1 = arith.constant 0 : i32
    return %c0_i32, %c0_i32_0 : i32, i32
  }
  func.func @transform_3(%arg0: i32) -> (i32, i32) {
    %c0_i32 = arith.constant 0 : i32
    %c0_i32_0 = arith.constant 0 : i32
    %c0_i32_1 = arith.constant 0 : i32
    return %c0_i32, %c0_i32_0 : i32, i32
  }
  func.func @transform_4(%arg0: i32) -> (i32, i32) {
    %c0_i32 = arith.constant 0 : i32
    %c0_i32_0 = arith.constant 0 : i32
    %c0_i32_1 = arith.constant 0 : i32
    return %c0_i32, %c0_i32_0 : i32, i32
  }
  func.func @transform_5(%arg0: i32) -> (i32, i32) {
    %c0_i32 = arith.constant 0 : i32
    %c0_i32_0 = arith.constant 0 : i32
    %c0_i32_1 = arith.constant 0 : i32
    return %c0_i32, %c0_i32_0 : i32, i32
  }
  func.func @transform_6(%arg0: i32) -> (i32, i32) {
    %c0_i32 = arith.constant 0 : i32
    %c0_i32_0 = arith.constant 0 : i32
    %c0_i32_1 = arith.constant 0 : i32
    return %c0_i32, %c0_i32_0 : i32, i32
  }
  func.func @transform_7(%arg0: i32) -> (i32, i32) {
    %c0_i32 = arith.constant 0 : i32
    %c0_i32_0 = arith.constant 0 : i32
    return %arg0, %c0_i32 : i32, i32
  }
}

</mosaic_0001>

<bundles_post_ra>
// kernel: tpu_custom_call.1
= control target key start
LH: loop header
LB: loop body
LE: loop exit
PB: predicated region body
PF: predicated region fallthrough
CT: control target
= control target key end

     0   :  { %12 = vsyncpa [#allocation3], 0  ;;  %s446_s0 = inlined_call_operand.hbm [shape: f32[8,30], index: 0, kind: input, shape index: {}]   ;;  %s447_s1 = inlined_call_operand.hbm [shape: f32[30,128], index: 1, kind: input, shape index: {}]   ;;  %s448_s2 = inlined_call_operand.vmem [shape: f32[1,128], index: 2, kind: input, shape index: {}]   ;;  %s449_s3 = inlined_call_operand.hbm [shape: f32[128,128], index: 3, kind: input, shape index: {}]   ;;  %s450_s4 = inlined_call_operand.vmem [shape: f32[1,128], index: 4, kind: input, shape index: {}]   ;;  %s451_s5 = inlined_call_operand.hbm [shape: f32[128,128], index: 5, kind: input, shape index: {}]   ;;  %s452_s6 = inlined_call_operand.vmem [shape: f32[1,128], index: 6, kind: input, shape index: {}]   ;;  %s453_s7 = inlined_call_operand.hbm [shape: f32[8,128], index: 7, kind: output, shape index: {}]  }
   0x1   :  { %13 = vsyncpa [#allocation6], 0 }
   0x2   :  { %14 = vsyncpa [#allocation9], 0  ;;  %s31_s26 = sshll.u32 %s447_s1, 4  ;;  %s32_s26 = int_to_ptr.hbm [resolvable:$true] %s31_s26 }
   0x3   :  { %15 = vsyncpa [#allocation4], 0  ;;  %s375_s27 = smov [#allocation5]   ;;  %s21_s8 = sshll.u32 %s446_s0, 4  ;;  %s22_s8 = int_to_ptr.hbm [resolvable:$true] %s21_s8 }
   0x4   :  { %s33_s28 = sshll.u32 %s375_s27, 4  ;;  %s376_s9 = smov 128   ;;  %s34_s28 = int_to_ptr.vmem [resolvable:$true] %s33_s28 }
   0x5   :  { %s377_s10 = smov 8   ;;  %s378_s11 = smov [#allocation2]  }
   0x6   :  { %39 = dma.hbm_to_vmem [thread:$0]  %s32_s26, 512, %s34_s28, [#allocation6], %s376_s9, %s376_s9, %s377_s10  }
   0x7   :  { %s23_s12 = sshll.u32 %s378_s11, 4  ;;  %s46_s15 = sshll.u32 %s449_s3, 4  ;;  %s24_s12 = int_to_ptr.vmem [resolvable:$true] %s23_s12  ;;  %s47_s15 = int_to_ptr.hbm [resolvable:$true] %s46_s15 }
   0x8   :  { %26 = dma.hbm_to_vmem [thread:$0]  %s22_s8, 128, %s24_s12, [#allocation3]  }
   0x9   :  { %s61_s17 = sshll.u32 %s451_s5, 4  ;;  %s379_s18 = smov [#allocation7]   ;;  %s62_s17 = int_to_ptr.hbm [resolvable:$true] %s61_s17 }
   0xa   :  { %s48_s19 = sshll.u32 %s379_s18, 4  ;;  %s380_s0 = smov [#allocation8]   ;;  %s49_s19 = int_to_ptr.vmem [resolvable:$true] %s48_s19 }
   0xb   :  { %54 = dma.hbm_to_vmem [thread:$0]  %s47_s15, 2048, %s49_s19, [#allocation6], %s376_s9, %s376_s9, %s377_s10  }
   0xc   :  { %s63_s20 = sshll.u32 %s380_s0, 4  ;;  %s64_s20 = int_to_ptr.vmem [resolvable:$true] %s63_s20 }
   0xd   :  { %69 = dma.hbm_to_vmem [thread:$0]  %s62_s17, 2048, %s64_s20, [#allocation9], %s376_s9, %s376_s9, %s377_s10  }
   0xe   :  { %367 = dma.done.wait [#allocation3], 128  }
   0xf   :  { %368 = vsyncadd [#allocation3], 4294967168 }
  0x10   :  { %369 = dma.done.wait [#allocation6], 2560  }
  0x11   :  { %370 = vsyncadd [#allocation6], 4294964736 }
  0x12   :  { %371 = dma.done.wait [#allocation9], 2048  }
  0x13   :  { %372 = vsyncadd [#allocation9], 4294965248  ;;  %vm101_vm0 = vcmask 1045504   ;;  %v92_v0 = vld [vmem:[#allocation5 + $0x18] sm:$0x3f]  ;;  %v91_v1 = vld [vmem:[#allocation5 + $0x10] sm:$0xff] }
  0x14   :  { %231 = vmatpush.msk.msra.mxu0 %vm101_vm0, %v92_v0  ;;  %v143_v2 = vld [vmem:[#allocation7 + $0x78] sm:$0xff]  ;;  %v90_v3 = vld [vmem:[#allocation5 + $0x8] sm:$0xff]  ;;  %v142_v4 = vld [vmem:[#allocation7 + $0x70] sm:$0xff]  ;;  %vm97_vm1 = vcmask 244736   ;;  %s381_s24 = smov [#allocation10]   ;;  %s219_s28 = sshll.u32 %s453_s7, 4  ;;  %s220_s28 = int_to_ptr.hbm [resolvable:$true] %s219_s28 }
  0x15   :  { %148 = vmatpush.msra.mxu1 %v143_v2  ;;  %v141_v5 = vld [vmem:[#allocation7 + $0x68] sm:$0xff]  ;;  %v89_v6 = vld [vmem:[#allocation5] sm:$0xff]  ;;  %v88_v7 = vld [vmem:[#allocation2] sm:$0xff]  ;;  %s217_s25 = sshll.u32 %s381_s24, 4  ;;  %s218_s25 = int_to_ptr.vmem [resolvable:$true] %s217_s25 }
  0x16   :  { %118 = vmatpush.msra.mxu0 %v91_v1  ;;  %v140_v8 = vld [vmem:[#allocation7 + $0x60] sm:$0xff]  ;;  %v139_v9 = vld [vmem:[#allocation7 + $0x58] sm:$0xff]  ;;  %v138_v10 = vld [vmem:[#allocation7 + $0x50] sm:$0xff] }
  0x17   :  { %149 = vmatpush.msra.mxu1 %v142_v4  ;;  %v137_v11 = vld [vmem:[#allocation7 + $0x48] sm:$0xff]  ;;  %v136_v12 = vld [vmem:[#allocation7 + $0x40] sm:$0xff]  ;;  %v135_v13 = vld [vmem:[#allocation7 + $0x38] sm:$0xff] }
  0x18   :  { %119 = vmatpush.msra.mxu0 %v90_v3  ;;  %v134_v14 = vld [vmem:[#allocation7 + $0x30] sm:$0xff]  ;;  %v133_v15 = vld [vmem:[#allocation7 + $0x28] sm:$0xff]  ;;  %v132_v16 = vld [vmem:[#allocation7 + $0x20] sm:$0xff] }
  0x19   :  { %150 = vmatpush.msra.mxu1 %v141_v5  ;;  %v131_v17 = vld [vmem:[#allocation7 + $0x18] sm:$0xff]  ;;  %v130_v18 = vld [vmem:[#allocation7 + $0x10] sm:$0xff]  ;;  %v129_v19 = vld [vmem:[#allocation7 + $0x8] sm:$0xff] }
  0x1a   :  { %120 = vmatpush.msra.mxu0 %v89_v6  ;;  %v128_v20 = vld [vmem:[#allocation7] sm:$0xff]  ;;  %v186_v21 = vld [vmem:[#allocation8 + $0x78] sm:$0xff]  ;;  %v185_v22 = vld [vmem:[#allocation8 + $0x70] sm:$0xff] }
  0x1b   :  { %232 = vmatmul.msk.f32.vlgmr.msra.gmra.mxu0 %vm97_vm1, %v88_v7  ;;  %151 = vmatpush.msra.mxu1 %v140_v8  ;;  %v184_v23 = vld [vmem:[#allocation8 + $0x68] sm:$0xff]  ;;  %v183_v24 = vld [vmem:[#allocation8 + $0x60] sm:$0xff]  ;;  %v182_v25 = vld [vmem:[#allocation8 + $0x58] sm:$0xff] }
  0x1c   :  { %191 = vmatpush.msra.mxu2 %v186_v21  ;;  %v181_v26 = vld [vmem:[#allocation8 + $0x50] sm:$0xff]  ;;  %v180_v27 = vld [vmem:[#allocation8 + $0x48] sm:$0xff]  ;;  %v179_v28 = vld [vmem:[#allocation8 + $0x40] sm:$0xff] }
  0x1d   :  { %152 = vmatpush.msra.mxu1 %v139_v9  ;;  %v178_v29 = vld [vmem:[#allocation8 + $0x38] sm:$0xff]  ;;  %v177_v36 = vld [vmem:[#allocation8 + $0x30] sm:$0xff]  ;;  %v176_v37 = vld [vmem:[#allocation8 + $0x28] sm:$0xff] }
  0x1e   :  { %192 = vmatpush.msra.mxu2 %v185_v22  ;;  %v240_v30 = vld [vmem:[%s448_s2] ss:$0 sm:$0xff]  ;;  %v175_v38 = vld [vmem:[#allocation8 + $0x20] sm:$0xff]  ;;  %v173_v40 = vld [vmem:[#allocation8 + $0x10] sm:$0xff] }
  0x1f   :  { %153 = vmatpush.msra.mxu1 %v138_v10  ;;  %v174_v39 = vld [vmem:[#allocation8 + $0x18] sm:$0xff]  ;;  %v172_v41 = vld [vmem:[#allocation8 + $0x8] sm:$0xff]  ;;  %v171_v42 = vld [vmem:[#allocation8] sm:$0xff] }
  0x20   :  { %193 = vmatpush.msra.mxu2 %v184_v23  ;;  %v241_v43 = vld [vmem:[%s450_s4] ss:$0 sm:$0xff] }
  0x21   :  { %154 = vmatpush.msra.mxu1 %v137_v11  ;;  %v242_v49 = vld [vmem:[%s452_s6] ss:$0 sm:$0xff] }
  0x22   :  { %194 = vmatpush.msra.mxu2 %v183_v24 }
  0x23   :  { %155 = vmatpush.msra.mxu1 %v136_v12 }
  0x24   :  { %195 = vmatpush.msra.mxu2 %v182_v25 }
  0x25   :  { %156 = vmatpush.msra.mxu1 %v135_v13 }
  0x26   :  { %196 = vmatpush.msra.mxu2 %v181_v26 }
  0x27   :  { %157 = vmatpush.msra.mxu1 %v134_v14 }
  0x28   :  { %197 = vmatpush.msra.mxu2 %v180_v27 }
  0x29   :  { %158 = vmatpush.msra.mxu1 %v133_v15 }
  0x2a   :  { %198 = vmatpush.msra.mxu2 %v179_v28 }
  0x2b   :  { %159 = vmatpush.msra.mxu1 %v132_v16 }
  0x2c   :  { %199 = vmatpush.msra.mxu2 %v178_v29 }
  0x2d   :  { %160 = vmatpush.msra.mxu1 %v131_v17 }
  0x2e   :  { %200 = vmatpush.msra.mxu2 %v177_v36 }
  0x2f   :  { %161 = vmatpush.msra.mxu1 %v130_v18 }
  0x30   :  { %201 = vmatpush.msra.mxu2 %v176_v37 }
  0x31   :  { %162 = vmatpush.msra.mxu1 %v129_v19 }
  0x32   :  { %202 = vmatpush.msra.mxu2 %v175_v38 }
  0x33   :  { %163 = vmatpush.msra.mxu1 %v128_v20 }
  0x34   :  { %203 = vmatpush.msra.mxu2 %v174_v39 }
  0x36   :  { %204 = vmatpush.msra.mxu2 %v173_v40 }
  0x38   :  { %205 = vmatpush.msra.mxu2 %v172_v41 }
  0x3a   :  { %206 = vmatpush.msra.mxu2 %v171_v42 }
  0x98   :  { %v122_v31 = vpop.f32.mrf.mxu0 }
  0x99   :  { %v123_v32 = vadd.f32 %v240_v30, %v122_v31 }
  0x9b   :  { %v125_v33 = vmul.f32 0.5, %v123_v32 }
  0x9d   :  { %243 = vtanh.f32 %v125_v33 }
  0xa3   :  { %v244_v34 = vpop.eup %243 }
  0xa4   :  { %v127_v35 = vmul.f32 20.0, %v244_v34 }
  0xa6   :  { %164 = vmatmul.f32.vlgmr.msra.gmra.mxu1 %v127_v35 }
 0x123   :  { %v165_v44 = vpop.f32.mrf.mxu1 }
 0x124   :  { %v166_v45 = vadd.f32 %v241_v43, %v165_v44 }
 0x126   :  { %v168_v46 = vmul.f32 0.5, %v166_v45 }
 0x128   :  { %245 = vtanh.f32 %v168_v46 }
 0x12e   :  { %v246_v47 = vpop.eup %245 }
 0x12f   :  { %v170_v48 = vmul.f32 20.0, %v246_v47 }
 0x131   :  { %207 = vmatmul.f32.vlgmr.msra.gmra.mxu2 %v170_v48 }
 0x1b4   :  { %v208_v50 = vpop.f32.mrf.mxu2 }
 0x1b5   :  { %v209_v51 = vadd.f32 %v242_v49, %v208_v50 }
 0x1b7   :  { %211 = vst [vmem:[#allocation10] sm:$0xff] %v209_v51 }
 0x1b8   :  { %222 = dma.vmem_to_hbm [thread:$0]  %s218_s25, 128, %s220_s28, [#allocation4]  }
 0x1b9   :  { %373 = dma.done.wait [#allocation4], 128  }
 0x1ba   :  { %374 = vsyncadd [#allocation4], 4294967168 }
 0x1bb   :  { %227 = vsyncpa [#allocation3], 1 }
 0x1bc   :  { %228 = vsyncpa [#allocation6], 1 }
 0x1bd   :  { %229 = vsyncpa [#allocation9], 1 }
 0x1be   :  { %230 = vsyncpa [#allocation4], 1 }

</bundles_post_ra>
